<compile_context>
chip_gen: v5e
topology: v5e:2x2
jax: 0.10.0
libtpu: 0.0.40
codegen_flags: <defaults>
</compile_context>

<pallas_src>
import functools
import math

import jax
import jax.numpy as jnp
from jax.experimental import pallas as pl
from jax.experimental.pallas import tpu as pltpu

EPS = 1e-08                    # module adds eps to std (NOT to var), unbiased=False
_LANES = 128
_TARGET_BLOCK_BYTES = 1 << 20  # ~1 MiB input block per grid step
_TARGET_LANE_WIDTH = 512       # pack narrow H up to ~512 lanes for dense stores
_VMEM_LIMIT_BYTES = 32 << 20   # > v5e 16MiB default, safe on v7x's 64MiB VMEM


def _round_up(x, m):
    return -(-x // m) * m


def _ln_direct_kernel(x_ref, g_ref, b_ref, o_ref, *, hidden):
    """H is a multiple of 128: one hidden vector per row, already lane-dense."""
    x = x_ref[...].astype(jnp.float32)                      # (T, H)
    inv_h = 1.0 / hidden
    mean = jnp.sum(x, axis=-1, keepdims=True) * inv_h
    ex2 = jnp.sum(x * x, axis=-1, keepdims=True) * inv_h
    var = jnp.maximum(ex2 - mean * mean, 0.0)
    inv = pl.reciprocal(jnp.sqrt(var) + EPS, approx=True)   # EUP, not a VPU divide
    y = (x - mean) * inv
    o_ref[...] = (g_ref[...] * y + b_ref[...]).astype(o_ref.dtype)


def _ln_packed_kernel(x_ref, g_ref, b_ref, seg_ref, segt_ref, o_ref, *, hidden):
    """H not a multiple of 128: G = W/H rows packed per lane-row (W % 128 == 0).

    Per-group statistics use tiny MXU matmuls against a 0/1 segment matrix so
    every VPU op and every store stays lane-dense."""
    x = x_ref[...].astype(jnp.float32)                      # (T, W)
    seg = seg_ref[...]                                      # (W, G) 0/1
    segt = segt_ref[...]                                    # (G, W) 0/1
    inv_h = 1.0 / hidden
    s1 = jnp.dot(x, seg, preferred_element_type=jnp.float32) * inv_h      # mean   (T, G)
    s2 = jnp.dot(x * x, seg, preferred_element_type=jnp.float32) * inv_h  # E[x^2] (T, G)
    var = jnp.maximum(s2 - s1 * s1, 0.0)
    inv = pl.reciprocal(jnp.sqrt(var) + EPS, approx=True)                 # (T, G)
    mean_b = jnp.dot(s1, segt, preferred_element_type=jnp.float32)        # (T, W)
    inv_b = jnp.dot(inv, segt, preferred_element_type=jnp.float32)        # (T, W)
    y = (x - mean_b) * inv_b
    o_ref[...] = (g_ref[...] * y + b_ref[...]).astype(o_ref.dtype)


@jax.jit
def layer_norm(x, gamma, beta):
    B, S, H = x.shape
    rows = B * S
    itemsize = jnp.dtype(x.dtype).itemsize
    sublane = 16 if itemsize == 2 else 8   # bf16 packs 2 rows per sublane

    if H % _LANES == 0:
        G, W = 1, H
    else:
        w_min = H * (_LANES // math.gcd(H, _LANES))          # lcm(H, 128)
        G = max(1, _TARGET_LANE_WIDTH // w_min) * (w_min // H)
        W = G * H

    packed_rows = -(-rows // G)
    # Row tile sized for ~_TARGET_BLOCK_BYTES, sublane-aligned, no bigger than needed.
    tile_rows = max(sublane, (_TARGET_BLOCK_BYTES // (W * itemsize)) // sublane * sublane)
    tile_rows = min(tile_rows, _round_up(packed_rows, sublane))

    packed_rows_padded = _round_up(packed_rows, tile_rows)
    rows_padded = packed_rows_padded * G

    x2 = x.reshape(rows, H)
    if rows_padded != rows:
        # Zero rows are safe: std=0 -> y=0 (eps in denominator); sliced off below.
        x2 = jnp.pad(x2, ((0, rows_padded - rows), (0, 0)))
    xp = x2.reshape(packed_rows_padded, W)

    g_p = jnp.tile(gamma.astype(jnp.float32).reshape(1, H), (1, G))   # (1, W)
    b_p = jnp.tile(beta.astype(jnp.float32).reshape(1, H), (1, G))    # (1, W)

    grid = (packed_rows_padded // tile_rows,)
    row_spec = pl.BlockSpec((tile_rows, W), lambda i: (i, 0))
    const_spec = pl.BlockSpec((1, W), lambda i: (0, 0))
    compiler_params = pltpu.CompilerParams(
        dimension_semantics=("parallel",),          # shard rows across TCs on v7x
        vmem_limit_bytes=_VMEM_LIMIT_BYTES,
    )
    out_shape = jax.ShapeDtypeStruct((packed_rows_padded, W), x.dtype)

    if G == 1:
        out = pl.pallas_call(
            functools.partial(_ln_direct_kernel, hidden=H),
            out_shape=out_shape,
            grid_spec=pltpu.PrefetchScalarGridSpec(
                num_scalar_prefetch=0,
                grid=grid,
                in_specs=[row_spec, const_spec, const_spec],
                out_specs=row_spec,
            ),
            compiler_params=compiler_params,
        )(xp, g_p, b_p)
    else:
        lane = jax.lax.broadcasted_iota(jnp.int32, (W, G), 0)
        grp = jax.lax.broadcasted_iota(jnp.int32, (W, G), 1)
        seg = (lane // H == grp).astype(jnp.float32)            # (W, G)
        segt = seg.T                                            # (G, W)
        out = pl.pallas_call(
            functools.partial(_ln_packed_kernel, hidden=H),
            out_shape=out_shape,
            grid_spec=pltpu.PrefetchScalarGridSpec(
                num_scalar_prefetch=0,
                grid=grid,
                in_specs=[
                    row_spec,
                    const_spec,
                    const_spec,
                    pl.BlockSpec((W, G), lambda i: (0, 0)),
                    pl.BlockSpec((G, W), lambda i: (0, 0)),
                ],
                out_specs=row_spec,
            ),
            compiler_params=compiler_params,
        )(xp, g_p, b_p, seg, segt)

    out = out.reshape(rows_padded, H)[:rows]
    return out.reshape(B, S, H)


if __name__ == "__main__":
    B, S, H = 2, 8, 32  # small shapes; module's `size` == H

    key = jax.random.PRNGKey(0)
    x = jax.random.normal(key, (B, S, H), dtype=jnp.float32)

    # nn.Parameter(torch.ones(size)) / torch.zeros(size)
    gamma = jnp.ones((H,), dtype=jnp.float32)
    beta = jnp.zeros((H,), dtype=jnp.float32)

    out = layer_norm(x, gamma, beta)
    out = jax.block_until_ready(out)

    # Pure-JAX reference: (x - mean) / (std_unbiased=False + eps), then affine.
    mean = jnp.mean(x, axis=2, keepdims=True)
    std = jnp.sqrt(jnp.mean((x - mean) ** 2, axis=2, keepdims=True))
    ref = gamma * ((x - mean) / (std + EPS)) + beta
    # Loose-ish tolerance because pl.reciprocal(approx=True) is an EUP approximation.
    assert jnp.allclose(out, ref, atol=1e-2, rtol=1e-2), "mismatch vs reference"

    print("KERNEL_OK")
</pallas_src>

<mosaic_0001>
module attributes {stable_mosaic.version = 11 : i64} {
  func.func @_ln_packed_kernel(%arg0: i32, %arg1: memref<8x512xf32, #tpu.memory_space<vmem>>, %arg2: memref<1x512xf32, #tpu.memory_space<vmem>>, %arg3: memref<1x512xf32, #tpu.memory_space<vmem>>, %arg4: memref<512x16xf32, #tpu.memory_space<vmem>>, %arg5: memref<16x512xf32, #tpu.memory_space<vmem>>, %arg6: memref<8x512xf32, #tpu.memory_space<vmem>>) attributes {dimension_semantics = [#tpu.dimension_semantics<parallel>], iteration_bounds = array<i64: 1>, scalar_prefetch = 0 : i64, scratch_operands = 0 : i64, tpu.core_type = #tpu.core_type<tc>, window_params = [{transform_indices = @transform_0, window_bounds = array<i64: 8, 512>}, {pipeline_mode = #tpu.pipeline_mode<synchronous>, transform_indices = @transform_1, window_bounds = array<i64: 1, 512>}, {pipeline_mode = #tpu.pipeline_mode<synchronous>, transform_indices = @transform_2, window_bounds = array<i64: 1, 512>}, {pipeline_mode = #tpu.pipeline_mode<synchronous>, transform_indices = @transform_3, window_bounds = array<i64: 512, 16>}, {pipeline_mode = #tpu.pipeline_mode<synchronous>, transform_indices = @transform_4, window_bounds = array<i64: 16, 512>}, {transform_indices = @transform_5, window_bounds = array<i64: 8, 512>}]} {
    %c0 = arith.constant 0 : index
    %c0_0 = arith.constant 0 : index
    %0 = vector.load %arg1[%c0, %c0_0] : memref<8x512xf32, #tpu.memory_space<vmem>>, vector<8x512xf32>
    %c0_1 = arith.constant 0 : index
    %c0_2 = arith.constant 0 : index
    %1 = vector.load %arg4[%c0_1, %c0_2] : memref<512x16xf32, #tpu.memory_space<vmem>>, vector<512x16xf32>
    %c0_3 = arith.constant 0 : index
    %c0_4 = arith.constant 0 : index
    %2 = vector.load %arg5[%c0_3, %c0_4] : memref<16x512xf32, #tpu.memory_space<vmem>>, vector<16x512xf32>
    %cst = arith.constant dense<0.000000e+00> : vector<8x16xf32>
    %3 = tpu.matmul %0, %1, %cst {dimension_numbers = #tpu.dot_dimension_numbers<[1], [0], [0], [1], [0, 0, 1, 1], [], []>} : vector<8x512xf32>, vector<512x16xf32>, vector<8x16xf32> -> vector<8x16xf32>
    %cst_5 = arith.constant 3.125000e-02 : f32
    %4 = vector.broadcast %cst_5 : f32 to vector<8x16xf32>
    %5 = arith.mulf %3, %4 : vector<8x16xf32>
    %6 = arith.mulf %0, %0 : vector<8x512xf32>
    %cst_6 = arith.constant dense<0.000000e+00> : vector<8x16xf32>
    %7 = tpu.matmul %6, %1, %cst_6 {dimension_numbers = #tpu.dot_dimension_numbers<[1], [0], [0], [1], [0, 0, 1, 1], [], []>} : vector<8x512xf32>, vector<512x16xf32>, vector<8x16xf32> -> vector<8x16xf32>
    %cst_7 = arith.constant 3.125000e-02 : f32
    %8 = vector.broadcast %cst_7 : f32 to vector<8x16xf32>
    %9 = arith.mulf %7, %8 : vector<8x16xf32>
    %10 = arith.mulf %5, %5 : vector<8x16xf32>
    %11 = arith.subf %9, %10 : vector<8x16xf32>
    %cst_8 = arith.constant 0.000000e+00 : f32
    %12 = vector.broadcast %cst_8 : f32 to vector<8x16xf32>
    %13 = arith.maximumf %11, %12 : vector<8x16xf32>
    %14 = math.sqrt %13 : vector<8x16xf32>
    %cst_9 = arith.constant 9.99999993E-9 : f32
    %15 = vector.broadcast %cst_9 : f32 to vector<8x16xf32>
    %16 = arith.addf %14, %15 : vector<8x16xf32>
    %17 = tpu.reciprocal %16 {approx = true} : vector<8x16xf32> -> vector<8x16xf32>
    %cst_10 = arith.constant dense<0.000000e+00> : vector<8x512xf32>
    %18 = tpu.matmul %5, %2, %cst_10 {dimension_numbers = #tpu.dot_dimension_numbers<[1], [0], [0], [1], [0, 0, 1, 1], [], []>} : vector<8x16xf32>, vector<16x512xf32>, vector<8x512xf32> -> vector<8x512xf32>
    %cst_11 = arith.constant dense<0.000000e+00> : vector<8x512xf32>
    %19 = tpu.matmul %17, %2, %cst_11 {dimension_numbers = #tpu.dot_dimension_numbers<[1], [0], [0], [1], [0, 0, 1, 1], [], []>} : vector<8x16xf32>, vector<16x512xf32>, vector<8x512xf32> -> vector<8x512xf32>
    %20 = arith.subf %0, %18 : vector<8x512xf32>
    %21 = arith.mulf %20, %19 : vector<8x512xf32>
    %c0_12 = arith.constant 0 : index
    %c0_13 = arith.constant 0 : index
    %22 = vector.load %arg2[%c0_12, %c0_13] : memref<1x512xf32, #tpu.memory_space<vmem>>, vector<1x512xf32>
    %23 = vector.broadcast %22 : vector<1x512xf32> to vector<8x512xf32>
    %24 = arith.mulf %23, %21 : vector<8x512xf32>
    %c0_14 = arith.constant 0 : index
    %c0_15 = arith.constant 0 : index
    %25 = vector.load %arg3[%c0_14, %c0_15] : memref<1x512xf32, #tpu.memory_space<vmem>>, vector<1x512xf32>
    %26 = vector.broadcast %25 : vector<1x512xf32> to vector<8x512xf32>
    %27 = arith.addf %24, %26 : vector<8x512xf32>
    %c0_16 = arith.constant 0 : index
    %c0_17 = arith.constant 0 : index
    %28 = vector.load %arg6[%c0_16, %c0_17] : memref<8x512xf32, #tpu.memory_space<vmem>>, vector<8x512xf32>
    tpu.vector_store %arg6[%c0_16, %c0_17], %27 {strides = array<i32>} : memref<8x512xf32, #tpu.memory_space<vmem>>, vector<8x512xf32>,
    return
  }
  func.func @transform_0(%arg0: i32) -> (i32, i32) {
    %c0_i32 = arith.constant 0 : i32
    %c0_i32_0 = arith.constant 0 : i32
    return %arg0, %c0_i32 : i32, i32
  }
  func.func @transform_1(%arg0: i32) -> (i32, i32) {
    %c0_i32 = arith.constant 0 : i32
    %c0_i32_0 = arith.constant 0 : i32
    %c0_i32_1 = arith.constant 0 : i32
    return %c0_i32, %c0_i32_0 : i32, i32
  }
  func.func @transform_2(%arg0: i32) -> (i32, i32) {
    %c0_i32 = arith.constant 0 : i32
    %c0_i32_0 = arith.constant 0 : i32
    %c0_i32_1 = arith.constant 0 : i32
    return %c0_i32, %c0_i32_0 : i32, i32
  }
  func.func @transform_3(%arg0: i32) -> (i32, i32) {
    %c0_i32 = arith.constant 0 : i32
    %c0_i32_0 = arith.constant 0 : i32
    %c0_i32_1 = arith.constant 0 : i32
    return %c0_i32, %c0_i32_0 : i32, i32
  }
  func.func @transform_4(%arg0: i32) -> (i32, i32) {
    %c0_i32 = arith.constant 0 : i32
    %c0_i32_0 = arith.constant 0 : i32
    %c0_i32_1 = arith.constant 0 : i32
    return %c0_i32, %c0_i32_0 : i32, i32
  }
  func.func @transform_5(%arg0: i32) -> (i32, i32) {
    %c0_i32 = arith.constant 0 : i32
    %c0_i32_0 = arith.constant 0 : i32
    return %arg0, %c0_i32 : i32, i32
  }
}

</mosaic_0001>

<bundles_post_ra>
// kernel: layer_norm.1
= control target key start
LH: loop header
LB: loop body
LE: loop exit
PB: predicated region body
PF: predicated region fallthrough
CT: control target
= control target key end

     0   :  { %vm279_vm0 = vcmask 130048   ;;  %s1066_s3 = inlined_call_operand.vmem [shape: f32[512,16], index: 3, kind: input, shape index: {}]   ;;  %s1067_s0 = inlined_call_operand.vmem [shape: f32[8,512], index: 0, kind: input, shape index: {}]   ;;  %s1068_s4 = inlined_call_operand.vmem [shape: f32[16,512], index: 4, kind: input, shape index: {}]   ;;  %s1069_s1 = inlined_call_operand.vmem [shape: f32[1,512], index: 1, kind: input, shape index: {}]   ;;  %s1070_s2 = inlined_call_operand.vmem [shape: f32[1,512], index: 2, kind: input, shape index: {}]   ;;  %s1071_s5 = inlined_call_operand.vmem [shape: f32[8,512], index: 5, kind: output, shape index: {}]  }
   0x1   :  { %v535_v0 = vld [vmem:[%s1066_s3 + $0x178] sm:$0xff]  ;;  %v540_v1 = vld [vmem:[%s1066_s3 + $0x170] sm:$0xff]  ;;  %v562_v5 = vld [vmem:[%s1066_s3 + $0x168] sm:$0xff] }
   0x2   :  { %v545_v2 = vld [vmem:[%s1066_s3 + $0x1f8] sm:$0xff]  ;;  %136 = vmatpush.msra.mxu2 %v535_v0  ;;  %v569_v6 = vld [vmem:[%s1066_s3 + $0x1f0] sm:$0xff]  ;;  %v586_v9 = vld [vmem:[%s1066_s3 + $0x1e8] sm:$0xff] }
   0x3   :  { %156 = vmatpush.msra.mxu3 %v545_v2  ;;  %v552_v3 = vld [vmem:[%s1066_s3 + $0x78] sm:$0xff]  ;;  %v574_v7 = vld [vmem:[%s1066_s3 + $0x70] sm:$0xff]  ;;  %v591_v10 = vld [vmem:[%s1066_s3 + $0x68] sm:$0xff] }
   0x4   :  { %v557_v4 = vld [vmem:[%s1066_s3 + $0xf8] sm:$0xff]  ;;  %96 = vmatpush.msra.mxu0 %v552_v3  ;;  %v579_v8 = vld [vmem:[%s1066_s3 + $0xf0] sm:$0xff]  ;;  %137 = vmatpush.msra.mxu2 %v540_v1  ;;  %v598_v11 = vld [vmem:[%s1066_s3 + $0x160] sm:$0xff] }
   0x5   :  { %116 = vmatpush.msra.mxu1 %v557_v4  ;;  %157 = vmatpush.msra.mxu3 %v569_v6  ;;  %v603_v12 = vld [vmem:[%s1066_s3 + $0xe8] sm:$0xff]  ;;  %v608_v13 = vld [vmem:[%s1066_s3 + $0x1e0] sm:$0xff]  ;;  %v627_v16 = vld [vmem:[%s1066_s3 + $0x158] sm:$0xff] }
   0x6   :  { %97 = vmatpush.msra.mxu0 %v574_v7  ;;  %138 = vmatpush.msra.mxu2 %v562_v5  ;;  %v615_v14 = vld [vmem:[%s1066_s3 + $0x60] sm:$0xff]  ;;  %v632_v17 = vld [vmem:[%s1066_s3 + $0x1d8] sm:$0xff]  ;;  %v651_v20 = vld [vmem:[%s1066_s3 + $0x150] sm:$0xff] }
   0x7   :  { %117 = vmatpush.msra.mxu1 %v579_v8  ;;  %158 = vmatpush.msra.mxu3 %v586_v9  ;;  %v620_v15 = vld [vmem:[%s1066_s3 + $0xe0] sm:$0xff]  ;;  %v639_v18 = vld [vmem:[%s1066_s3 + $0x58] sm:$0xff]  ;;  %v656_v21 = vld [vmem:[%s1066_s3 + $0x1d0] sm:$0xff] }
   0x8   :  { %98 = vmatpush.msra.mxu0 %v591_v10  ;;  %139 = vmatpush.msra.mxu2 %v598_v11  ;;  %v644_v19 = vld [vmem:[%s1066_s3 + $0xd8] sm:$0xff]  ;;  %v663_v22 = vld [vmem:[%s1066_s3 + $0x50] sm:$0xff]  ;;  %v675_v24 = vld [vmem:[%s1066_s3 + $0x148] sm:$0xff] }
   0x9   :  { %118 = vmatpush.msra.mxu1 %v603_v12  ;;  %159 = vmatpush.msra.mxu3 %v608_v13  ;;  %v668_v23 = vld [vmem:[%s1066_s3 + $0xd0] sm:$0xff]  ;;  %v680_v25 = vld [vmem:[%s1066_s3 + $0x1c8] sm:$0xff]  ;;  %v699_v28 = vld [vmem:[%s1066_s3 + $0x140] sm:$0xff] }
   0xa   :  { %99 = vmatpush.msra.mxu0 %v615_v14  ;;  %140 = vmatpush.msra.mxu2 %v627_v16  ;;  %v687_v26 = vld [vmem:[%s1066_s3 + $0x48] sm:$0xff]  ;;  %v704_v29 = vld [vmem:[%s1066_s3 + $0x1c0] sm:$0xff]  ;;  %v723_v32 = vld [vmem:[%s1066_s3 + $0x138] sm:$0xff] }
   0xb   :  { %119 = vmatpush.msra.mxu1 %v620_v15  ;;  %160 = vmatpush.msra.mxu3 %v632_v17  ;;  %v692_v27 = vld [vmem:[%s1066_s3 + $0xc8] sm:$0xff]  ;;  %v711_v30 = vld [vmem:[%s1066_s3 + $0x40] sm:$0xff]  ;;  %v728_v33 = vld [vmem:[%s1066_s3 + $0x1b8] sm:$0xff] }
   0xc   :  { %100 = vmatpush.msra.mxu0 %v639_v18  ;;  %141 = vmatpush.msra.mxu2 %v651_v20  ;;  %v716_v31 = vld [vmem:[%s1066_s3 + $0xc0] sm:$0xff]  ;;  %v735_v34 = vld [vmem:[%s1066_s3 + $0x38] sm:$0xff]  ;;  %v747_v36 = vld [vmem:[%s1066_s3 + $0x130] sm:$0xff] }
   0xd   :  { %120 = vmatpush.msra.mxu1 %v644_v19  ;;  %161 = vmatpush.msra.mxu3 %v656_v21  ;;  %v740_v35 = vld [vmem:[%s1066_s3 + $0xb8] sm:$0xff]  ;;  %v752_v37 = vld [vmem:[%s1066_s3 + $0x1b0] sm:$0xff]  ;;  %v771_v40 = vld [vmem:[%s1066_s3 + $0x128] sm:$0xff] }
   0xe   :  { %101 = vmatpush.msra.mxu0 %v663_v22  ;;  %142 = vmatpush.msra.mxu2 %v675_v24  ;;  %v759_v38 = vld [vmem:[%s1066_s3 + $0x30] sm:$0xff]  ;;  %v776_v41 = vld [vmem:[%s1066_s3 + $0x1a8] sm:$0xff]  ;;  %v795_v44 = vld [vmem:[%s1066_s3 + $0x120] sm:$0xff] }
   0xf   :  { %121 = vmatpush.msra.mxu1 %v668_v23  ;;  %162 = vmatpush.msra.mxu3 %v680_v25  ;;  %v764_v39 = vld [vmem:[%s1066_s3 + $0xb0] sm:$0xff]  ;;  %v783_v42 = vld [vmem:[%s1066_s3 + $0x28] sm:$0xff]  ;;  %v800_v45 = vld [vmem:[%s1066_s3 + $0x1a0] sm:$0xff] }
  0x10   :  { %102 = vmatpush.msra.mxu0 %v687_v26  ;;  %143 = vmatpush.msra.mxu2 %v699_v28  ;;  %v788_v43 = vld [vmem:[%s1066_s3 + $0xa8] sm:$0xff]  ;;  %v807_v46 = vld [vmem:[%s1066_s3 + $0x20] sm:$0xff]  ;;  %v819_v48 = vld [vmem:[%s1066_s3 + $0x118] sm:$0xff] }
  0x11   :  { %122 = vmatpush.msra.mxu1 %v692_v27  ;;  %163 = vmatpush.msra.mxu3 %v704_v29  ;;  %v812_v47 = vld [vmem:[%s1066_s3 + $0xa0] sm:$0xff]  ;;  %v824_v49 = vld [vmem:[%s1066_s3 + $0x198] sm:$0xff]  ;;  %v843_v52 = vld [vmem:[%s1066_s3 + $0x110] sm:$0xff] }
  0x12   :  { %103 = vmatpush.msra.mxu0 %v711_v30  ;;  %144 = vmatpush.msra.mxu2 %v723_v32  ;;  %v831_v50 = vld [vmem:[%s1066_s3 + $0x18] sm:$0xff]  ;;  %v848_v53 = vld [vmem:[%s1066_s3 + $0x190] sm:$0xff]  ;;  %v867_v56 = vld [vmem:[%s1066_s3 + $0x108] sm:$0xff] }
  0x13   :  { %123 = vmatpush.msra.mxu1 %v716_v31  ;;  %164 = vmatpush.msra.mxu3 %v728_v33  ;;  %v836_v51 = vld [vmem:[%s1066_s3 + $0x98] sm:$0xff]  ;;  %v855_v54 = vld [vmem:[%s1066_s3 + $0x10] sm:$0xff]  ;;  %v872_v57 = vld [vmem:[%s1066_s3 + $0x188] sm:$0xff] }
  0x14   :  { %104 = vmatpush.msra.mxu0 %v735_v34  ;;  %145 = vmatpush.msra.mxu2 %v747_v36  ;;  %v860_v55 = vld [vmem:[%s1066_s3 + $0x90] sm:$0xff]  ;;  %v879_v58 = vld [vmem:[%s1066_s3 + $0x8] sm:$0xff]  ;;  %v891_v60 = vld [vmem:[%s1066_s3 + $0x100] sm:$0xff] }
  0x15   :  { %124 = vmatpush.msra.mxu1 %v740_v35  ;;  %165 = vmatpush.msra.mxu3 %v752_v37  ;;  %v884_v59 = vld [vmem:[%s1066_s3 + $0x88] sm:$0xff]  ;;  %v896_v61 = vld [vmem:[%s1066_s3 + $0x180] sm:$0xff] }
  0x16   :  { %105 = vmatpush.msra.mxu0 %v759_v38  ;;  %146 = vmatpush.msra.mxu2 %v771_v40  ;;  %v905_v62 = vld [vmem:[%s1066_s3] sm:$0xff] }
  0x17   :  { %125 = vmatpush.msra.mxu1 %v764_v39  ;;  %166 = vmatpush.msra.mxu3 %v776_v41  ;;  %v910_v63 = vld [vmem:[%s1066_s3 + $0x80] sm:$0xff] }
  0x18   :  { %106 = vmatpush.msra.mxu0 %v783_v42  ;;  %147 = vmatpush.msra.mxu2 %v795_v44 }
  0x19   :  { %126 = vmatpush.msra.mxu1 %v788_v43  ;;  %167 = vmatpush.msra.mxu3 %v800_v45 }
  0x1a   :  { %107 = vmatpush.msra.mxu0 %v807_v46  ;;  %148 = vmatpush.msra.mxu2 %v819_v48 }
  0x1b   :  { %127 = vmatpush.msra.mxu1 %v812_v47  ;;  %168 = vmatpush.msra.mxu3 %v824_v49 }
  0x1c   :  { %108 = vmatpush.msra.mxu0 %v831_v50  ;;  %149 = vmatpush.msra.mxu2 %v843_v52 }
  0x1d   :  { %128 = vmatpush.msra.mxu1 %v836_v51  ;;  %169 = vmatpush.msra.mxu3 %v848_v53 }
  0x1e   :  { %109 = vmatpush.msra.mxu0 %v855_v54  ;;  %150 = vmatpush.msra.mxu2 %v867_v56 }
  0x1f   :  { %129 = vmatpush.msra.mxu1 %v860_v55  ;;  %170 = vmatpush.msra.mxu3 %v872_v57 }
  0x20   :  { %110 = vmatpush.msra.mxu0 %v879_v58  ;;  %151 = vmatpush.msra.mxu2 %v891_v60 }
  0x21   :  { %130 = vmatpush.msra.mxu1 %v884_v59  ;;  %171 = vmatpush.msra.mxu3 %v896_v61 }
  0x22   :  { %221 = vmatpush.msrb.mxu2 %v535_v0  ;;  %111 = vmatpush.msra.mxu0 %v905_v62  ;;  %v959_v0 = vld [vmem:[%s1067_s0 + $0x10] sm:$0xff] }
  0x23   :  { %241 = vmatpush.msrb.mxu3 %v545_v2  ;;  %131 = vmatpush.msra.mxu1 %v910_v63  ;;  %v977_v2 = vld [vmem:[%s1067_s0] sm:$0xff] }
  0x24   :  { %222 = vmatpush.msrb.mxu2 %v540_v1  ;;  %181 = vmatpush.msrb.mxu0 %v552_v3  ;;  %v968_v1 = vld [vmem:[%s1067_s0 + $0x18] sm:$0xff]  ;;  %v984_v3 = vld [vmem:[%s1067_s0 + $0x8] sm:$0xff] }
  0x25   :  { %201 = vmatpush.msrb.mxu1 %v557_v4  ;;  %242 = vmatpush.msrb.mxu3 %v569_v6  ;;  %v179_v4 = vmul.f32 %v959_v0, %v959_v0  ;;  %v177_v6 = vmul.f32 %v977_v2, %v977_v2 }
  0x26   :  { %223 = vmatpush.msrb.mxu2 %v562_v5  ;;  %182 = vmatpush.msrb.mxu0 %v574_v7  ;;  %v180_v5 = vmul.f32 %v968_v1, %v968_v1  ;;  %v178_v7 = vmul.f32 %v984_v3, %v984_v3 }
  0x27   :  { %202 = vmatpush.msrb.mxu1 %v579_v8  ;;  %243 = vmatpush.msrb.mxu3 %v586_v9  ;;  %v92_v8 = vld [vmem:[%s1068_s4 + $0x20] sm:$0xff]  ;;  %v93_v9 = vld [vmem:[%s1068_s4 + $0x28] sm:$0xff] }
  0x28   :  { %224 = vmatpush.msrb.mxu2 %v598_v11  ;;  %183 = vmatpush.msrb.mxu0 %v591_v10  ;;  %v94_v10 = vld [vmem:[%s1068_s4 + $0x30] sm:$0xff]  ;;  %v95_v11 = vld [vmem:[%s1068_s4 + $0x38] sm:$0xff] }
  0x29   :  { %203 = vmatpush.msrb.mxu1 %v603_v12  ;;  %244 = vmatpush.msrb.mxu3 %v608_v13  ;;  %v88_v12 = vld [vmem:[%s1068_s4] sm:$0xff]  ;;  %v89_v13 = vld [vmem:[%s1068_s4 + $0x8] sm:$0xff] }
  0x2a   :  { %225 = vmatpush.msrb.mxu2 %v627_v16  ;;  %184 = vmatpush.msrb.mxu0 %v615_v14  ;;  %v90_v14 = vld [vmem:[%s1068_s4 + $0x10] sm:$0xff] }
  0x2b   :  { %204 = vmatpush.msrb.mxu1 %v620_v15  ;;  %245 = vmatpush.msrb.mxu3 %v632_v17  ;;  %v91_v15 = vld [vmem:[%s1068_s4 + $0x18] sm:$0xff] }
  0x2c   :  { %226 = vmatpush.msrb.mxu2 %v651_v20  ;;  %185 = vmatpush.msrb.mxu0 %v639_v18 }
  0x2d   :  { %205 = vmatpush.msrb.mxu1 %v644_v19  ;;  %246 = vmatpush.msrb.mxu3 %v656_v21 }
  0x2e   :  { %227 = vmatpush.msrb.mxu2 %v675_v24  ;;  %186 = vmatpush.msrb.mxu0 %v663_v22 }
  0x2f   :  { %206 = vmatpush.msrb.mxu1 %v668_v23  ;;  %247 = vmatpush.msrb.mxu3 %v680_v25 }
  0x30   :  { %228 = vmatpush.msrb.mxu2 %v699_v28  ;;  %187 = vmatpush.msrb.mxu0 %v687_v26 }
  0x31   :  { %207 = vmatpush.msrb.mxu1 %v692_v27  ;;  %248 = vmatpush.msrb.mxu3 %v704_v29 }
  0x32   :  { %229 = vmatpush.msrb.mxu2 %v723_v32  ;;  %188 = vmatpush.msrb.mxu0 %v711_v30 }
  0x33   :  { %208 = vmatpush.msrb.mxu1 %v716_v31  ;;  %249 = vmatpush.msrb.mxu3 %v728_v33 }
  0x34   :  { %230 = vmatpush.msrb.mxu2 %v747_v36  ;;  %189 = vmatpush.msrb.mxu0 %v735_v34 }
  0x35   :  { %209 = vmatpush.msrb.mxu1 %v740_v35  ;;  %250 = vmatpush.msrb.mxu3 %v752_v37 }
  0x36   :  { %231 = vmatpush.msrb.mxu2 %v771_v40  ;;  %190 = vmatpush.msrb.mxu0 %v759_v38 }
  0x37   :  { %210 = vmatpush.msrb.mxu1 %v764_v39  ;;  %251 = vmatpush.msrb.mxu3 %v776_v41 }
  0x38   :  { %232 = vmatpush.msrb.mxu2 %v795_v44  ;;  %191 = vmatpush.msrb.mxu0 %v783_v42 }
  0x39   :  { %152 = vmatmul.f32.vlgmr.msra.gmra.mxu2 %v959_v0  ;;  %211 = vmatpush.msrb.mxu1 %v788_v43 }
  0x3a   :  { %233 = vmatpush.msrb.mxu2 %v819_v48  ;;  %252 = vmatpush.msrb.mxu3 %v800_v45 }
  0x3b   :  { %172 = vmatmul.f32.vlgmr.msra.gmra.mxu3 %v968_v1  ;;  %192 = vmatpush.msrb.mxu0 %v807_v46 }
  0x3c   :  { %212 = vmatpush.msrb.mxu1 %v812_v47  ;;  %234 = vmatpush.msrb.mxu2 %v843_v52 }
  0x3d   :  { %253 = vmatpush.msrb.mxu3 %v824_v49  ;;  %112 = vmatmul.f32.vlgmr.msra.gmra.mxu0 %v977_v2  ;;  %v454_v49 = vld [vmem:[%s1069_s1] sm:$0xf] }
  0x3e   :  { %132 = vmatmul.f32.vlgmr.msra.gmra.mxu1 %v984_v3  ;;  %193 = vmatpush.msrb.mxu0 %v831_v50  ;;  %v468_v50 = vld [vmem:[%s1070_s2] sm:$0xf] }
  0x3f   :  { %213 = vmatpush.msrb.mxu1 %v836_v51  ;;  %235 = vmatpush.msrb.mxu2 %v867_v56  ;;  %v457_v56 = vperm.slane %v454_v49, 1 }
  0x40   :  { %254 = vmatpush.msrb.mxu3 %v848_v53  ;;  %194 = vmatpush.msrb.mxu0 %v855_v54 }
  0x41   :  { %214 = vmatpush.msrb.mxu1 %v860_v55  ;;  %236 = vmatpush.msrb.mxu2 %v891_v60  ;;  %v456_v55 = vperm.slane %v454_v49, 0  ;;  %v470_v60 = vperm.slane %v468_v50, 0 }
  0x42   :  { %255 = vmatpush.msrb.mxu3 %v872_v57  ;;  %237 = vmatmul.f32.vlgmr.msrb.gmra.mxu2 %v179_v4 }
  0x43   :  { %195 = vmatpush.msrb.mxu0 %v879_v58  ;;  %215 = vmatpush.msrb.mxu1 %v884_v59 }
  0x44   :  { %256 = vmatpush.msrb.mxu3 %v896_v61  ;;  %337 = vmatpush.msra.mxu2 %v94_v10 }
  0x45   :  { %257 = vmatmul.f32.vlgmr.msrb.gmra.mxu3 %v180_v5  ;;  %196 = vmatpush.msrb.mxu0 %v905_v62  ;;  %v471_v62 = vperm.slane %v468_v50, 1 }
  0x46   :  { %216 = vmatpush.msrb.mxu1 %v910_v63  ;;  %197 = vmatmul.f32.vlgmr.msrb.gmra.mxu0 %v177_v6 }
  0x47   :  { %217 = vmatmul.f32.vlgmr.msrb.gmra.mxu1 %v178_v7  ;;  %297 = vmatpush.msra.mxu0 %v92_v8 }
  0x48   :  { %317 = vmatpush.msra.mxu1 %v93_v9  ;;  %357 = vmatpush.msra.mxu3 %v95_v11 }
  0x49   :  { %298 = vmatpush.msra.mxu0 %v88_v12  ;;  %338 = vmatpush.msra.mxu2 %v90_v14 }
  0x4a   :  { %318 = vmatpush.msra.mxu1 %v89_v13  ;;  %358 = vmatpush.msra.mxu3 %v91_v15 }
  0x4b   :  { %420 = vmatpush.msrb.mxu2 %v94_v10  ;;  %380 = vmatpush.msrb.mxu0 %v92_v8  ;;  %v458_v8 = vperm.slane %v454_v49, 2 }
  0x4c   :  { %440 = vmatpush.msrb.mxu3 %v95_v11  ;;  %400 = vmatpush.msrb.mxu1 %v93_v9 }
  0x4d   :  { %421 = vmatpush.msrb.mxu2 %v90_v14  ;;  %381 = vmatpush.msrb.mxu0 %v88_v12  ;;  %v472_v12 = vperm.slane %v468_v50, 2  ;;  %v473_v14 = vperm.slane %v468_v50, 3 }
  0x4e   :  { %441 = vmatpush.msrb.mxu3 %v91_v15  ;;  %401 = vmatpush.msrb.mxu1 %v89_v13 }
  0xba   :  { %v113_v16 = vpop.f32.mrf.mxu0 }
  0xbb   :  { %v133_v17 = vpop.f32.mrf.mxu1 }
  0xbc   :  { %v134_v18 = vadd.f32 %v133_v17, %v113_v16  ;;  %v153_v19 = vpop.f32.mrf.mxu2 }
  0xbe   :  { %v154_v20 = vadd.f32 %v153_v19, %v134_v18  ;;  %v173_v21 = vpop.f32.mrf.mxu3 }
  0xc0   :  { %v174_v22 = vadd.f32 %v173_v21, %v154_v20 }
  0xc2   :  { %v176_v23 = vmul.f32 0.03125, %v174_v22 }
  0xc3   :  { %v198_v24 = vpop.f32.mrf.mxu0 }
  0xc4   :  { %v218_v25 = vpop.f32.mrf.mxu1  ;;  %490 = vmatmul.msk.f32.vlgmr.msra.gmra.mxu0 %vm279_vm0, %v176_v23  ;;  %491 = vmatmul.msk.f32.vlgmr.msra.gmra.mxu1 %vm279_vm0, %v176_v23  ;;  %v262_v32 = vmul.f32 %v176_v23, %v176_v23 }
  0xc5   :  { %v219_v26 = vadd.f32 %v218_v25, %v198_v24  ;;  %492 = vmatmul.msk.f32.vlgmr.msra.gmra.mxu2 %vm279_vm0, %v176_v23  ;;  %493 = vmatmul.msk.f32.vlgmr.msra.gmra.mxu3 %vm279_vm0, %v176_v23  ;;  %v238_v27 = vpop.f32.mrf.mxu2 }
  0xc7   :  { %v239_v28 = vadd.f32 %v238_v27, %v219_v26 }
  0xc8   :  { %v258_v29 = vpop.f32.mrf.mxu3 }
  0xc9   :  { %v259_v30 = vadd.f32 %v258_v29, %v239_v28 }
  0xcb   :  { %v261_v31 = vmul.f32 0.03125, %v259_v30 }
  0xcd   :  { %v263_v33 = vsub.f32 %v261_v31, %v262_v32 }
  0xcf   :  { %v264_v34 = vmax.f32 %v263_v33, 0.0 }
  0xd1   :  { %498 = vrsqrt.f32 %v264_v34  ;;  %vm272_vm1 = vcmp.eq.f32.partialorder %v264_v34, inf  ;;  %v275_v42 = vand.u32 2147483648, %v264_v34  ;;  %vm274_vm2 = vcmp.eq.f32.partialorder %v264_v34, 0.0 }
  0xd7   :  { %v499_v35 = vpop.eup %498 }
  0xd8   :  { %v266_v36 = vmul.f32 %v499_v35, %v264_v34 }
  0xda   :  { %v267_v37 = vmul.f32 %v499_v35, %v266_v36 }
  0xdc   :  { %v268_v38 = vmul.f32 0.5, %v267_v37 }
  0xde   :  { %v269_v39 = vsub.f32 1.5, %v268_v38 }
  0xe0   :  { %v270_v40 = vmul.f32 %v499_v35, %v269_v39 }
  0xe2   :  { %v271_v41 = vmul.f32 %v270_v40, %v264_v34 }
  0xe4   :  { %v273_v43 = vsel %vm272_vm1, %v264_v34, %v271_v41 }
  0xe5   :  { %v276_v44 = vsel %vm274_vm2, %v275_v42, %v273_v43 }
  0xe6   :  { %v277_v45 = vadd.f32 1e-08, %v276_v44 }
  0xe8   :  { %500 = vrcp.f32 %v277_v45 }
  0xee   :  { %v501_v46 = vpop.eup %500 }
  0xef   :  { %494 = vmatmul.msk.f32.vlgmr.msrb.gmra.mxu0 %vm279_vm0, %v501_v46  ;;  %495 = vmatmul.msk.f32.vlgmr.msrb.gmra.mxu1 %vm279_vm0, %v501_v46 }
  0xf0   :  { %496 = vmatmul.msk.f32.vlgmr.msrb.gmra.mxu2 %vm279_vm0, %v501_v46  ;;  %497 = vmatmul.msk.f32.vlgmr.msrb.gmra.mxu3 %vm279_vm0, %v501_v46 }
 0x141   :  { %v300_v47 = vpop.f32.mrf.mxu0  ;;  %v320_v48 = vpop.f32.mrf.mxu1 }
 0x142   :  { %v446_v51 = vsub.f32 %v977_v2, %v300_v47  ;;  %v447_v52 = vsub.f32 %v984_v3, %v320_v48  ;;  %v459_v3 = vperm.slane %v454_v49, 3 }
 0x148   :  { %v340_v53 = vpop.f32.mrf.mxu2  ;;  %v360_v54 = vpop.f32.mrf.mxu3 }
 0x149   :  { %v448_v7 = vsub.f32 %v959_v0, %v340_v53  ;;  %v449_v2 = vsub.f32 %v968_v1, %v360_v54 }
 0x16c   :  { %v383_v57 = vpop.f32.mrf.mxu0  ;;  %v403_v58 = vpop.f32.mrf.mxu1 }
 0x16d   :  { %v450_v59 = vmul.f32 %v446_v51, %v383_v57  ;;  %v451_v61 = vmul.f32 %v447_v52, %v403_v58 }
 0x16f   :  { %v464_v63 = vmul.f32 %v456_v55, %v450_v59  ;;  %v465_v4 = vmul.f32 %v457_v56, %v451_v61 }
 0x171   :  { %v478_v5 = vadd.f32 %v470_v60, %v464_v63  ;;  %v479_v6 = vadd.f32 %v471_v62, %v465_v4 }
 0x173   :  { %482 = vst [vmem:[%s1071_s5] sm:$0xff] %v478_v5  ;;  %v423_v9 = vpop.f32.mrf.mxu2  ;;  %v443_v10 = vpop.f32.mrf.mxu3 }
 0x174   :  { %483 = vst [vmem:[%s1071_s5 + $0x8] sm:$0xff] %v479_v6  ;;  %v452_v11 = vmul.f32 %v448_v7, %v423_v9  ;;  %v453_v13 = vmul.f32 %v449_v2, %v443_v10 }
 0x176   :  { %v466_v15 = vmul.f32 %v458_v8, %v452_v11  ;;  %v467_v0 = vmul.f32 %v459_v3, %v453_v13 }
 0x178   :  { %v480_v16 = vadd.f32 %v472_v12, %v466_v15  ;;  %v481_v1 = vadd.f32 %v473_v14, %v467_v0 }
 0x17a   :  { %484 = vst [vmem:[%s1071_s5 + $0x10] sm:$0xff] %v480_v16 }
 0x17b   :  { %485 = vst [vmem:[%s1071_s5 + $0x18] sm:$0xff] %v481_v1 }

</bundles_post_ra>
